<compile_context>
chip_gen: v6e
topology: v6e:2x2x1
jax: 0.10.0
libtpu: 0.0.40
codegen_flags: <defaults>
</compile_context>

<pallas_src>
import functools

import jax
import jax.numpy as jnp
from jax.experimental import pallas as pl
from jax.experimental.pallas import tpu as pltpu


_TARGET_BLOCK_BYTES = 4 << 20   # ~4 MiB per pipelined buffer (amortizes ~0.35us/step)
_VMEM_BUDGET_BYTES = 36 << 20   # keep ~6x block bytes (2 in + 2 out + relayout tmp) under this
_VMEM_LIMIT_BYTES = 48 << 20    # scoped VMEM limit; fits v7x 64 MiB physical, free on v5e/v6e
_MIN_GRID_STEPS = 4             # pipelining depth / megacore sharding floor


def _pixel_shuffle_1d_kernel(x_ref, o_ref, *, r):
    # x_ref block: (RT*r, LT)   rows = folded channels, lanes = length
    # o_ref block: (RT, LT*r)
    ct_r, lt = x_ref.shape
    ct = ct_r // r
    x = x_ref[...]                       # (RT*r, LT)
    x = x.reshape(ct, r, lt)             # split channel phase
    x = jnp.transpose(x, (0, 2, 1))      # (RT, LT, r): bounded per-tile XLU relayout
    o_ref[...] = x.reshape(ct, lt * r)   # lane-dense store of the full block


def _reference(x, r):
    B, C, L = x.shape
    c_out = C // r
    y = x.reshape(B, c_out, r, L)
    y = jnp.transpose(y, (0, 1, 3, 2))
    return y.reshape(B, c_out, L * r)


def _largest_aligned_divisor_leq(n, target, align):
    """Largest d with d | n, d % align == 0, align <= d <= target; None if none."""
    t = min(target, n)
    t -= t % align
    while t >= align:
        if n % t == 0:
            return t
        t -= align
    return None


def _pick_tiles(rows, L, r, itemsize):
    """Pick (rt, lt): output-row tile and length tile.

    Returns None only if no (sublane,128)-legal tiling fits the VMEM budget
    (caller then falls back to the correct XLA reference path).
    """
    sub_align = max(8, 32 // itemsize)      # 8 f32, 16 bf16, 32 int8/fp8

    # --- lane (length) tile: prefer full L (contiguous row DMAs, widest vst). ---
    if L % 128 != 0:
        lt = L                               # full-extent is the only legal option
    elif L * itemsize <= 32 * 1024:
        lt = L                               # modest rows: keep them whole
    else:
        lane_target = max(128, _TARGET_BLOCK_BYTES // (sub_align * r * itemsize))
        lt = _largest_aligned_divisor_leq(L, lane_target, 128) or L

    # --- row tile: scale with r so block bytes stay ~_TARGET_BLOCK_BYTES. ---
    if rows % sub_align != 0:
        rt = rows                            # full-extent fallback (always legal)
    else:
        rt_target = max(sub_align, _TARGET_BLOCK_BYTES // (r * lt * itemsize))
        rt = _largest_aligned_divisor_leq(rows, rt_target, sub_align) or rows

    def steps(rt_, lt_):
        return (rows // rt_) * (L // lt_)

    def block_bytes(rt_, lt_):
        return rt_ * r * lt_ * itemsize

    def shrink_rows(rt_):
        if rows % sub_align == 0 and rt_ > sub_align:
            d = _largest_aligned_divisor_leq(rows, rt_ // 2, sub_align)
            if d is not None and d < rt_:
                return d
        return None

    def shrink_lanes(lt_):
        if L % 128 == 0 and lt_ > 128:
            d = _largest_aligned_divisor_leq(L, lt_ // 2, 128)
            if d is not None and d < lt_:
                return d
        return None

    # Guarantee enough grid steps (shrink rows first: keeps the widest
    # lane-dense output stores and contiguous row DMAs).
    while steps(rt, lt) < _MIN_GRID_STEPS:
        d = shrink_rows(rt)
        if d is not None:
            rt = d
            continue
        d = shrink_lanes(lt)
        if d is not None:
            lt = d
            continue
        break                                 # cannot split further; accept shallow grid

    # VMEM guard: shrink tiles instead of abandoning the kernel.
    while 6 * block_bytes(rt, lt) > _VMEM_BUDGET_BYTES:
        d = shrink_rows(rt)
        if d is not None:
            rt = d
            continue
        d = shrink_lanes(lt)
        if d is not None:
            lt = d
            continue
        return None                           # non-tileable dims on a huge array

    return rt, lt


def pixel_shuffle_1d(x, upscale_factor, *, use_kernel=None):
    """x: (B, C, L) with C % upscale_factor == 0 -> (B, C//r, L*r)."""
    r = int(upscale_factor)
    B, C, L = x.shape
    if C % r != 0:
        raise ValueError("channels must be divisible by upscale_factor")
    if r == 1:
        return x                              # pure no-op
    c_out = C // r
    rows = B * c_out                          # folded output row count

    # Tiny problems: XLA's fused reshape/transpose beats kernel launch overhead.
    if use_kernel is None:
        use_kernel = x.size >= (1 << 16)
    if not use_kernel:
        return _reference(x, r)

    itemsize = jnp.dtype(x.dtype).itemsize
    tiles = _pick_tiles(rows, L, r, itemsize)
    if tiles is None:
        # No legal tiling fits the VMEM budget (non-divisible dims on a huge
        # array); degrade to the correct XLA path rather than miscompile.
        return _reference(x, r)
    rt, lt = tiles

    # Free (contiguous) reshape: row R*r + s of x2 is channel co*r + s of batch
    # b, where R = b*c_out + co, so the folded op is out2[R, l*r+s] = x2[R*r+s, l].
    x2 = x.reshape(rows * r, L)
    grid = (rows // rt, L // lt)

    out2 = pl.pallas_call(
        functools.partial(_pixel_shuffle_1d_kernel, r=r),
        out_shape=jax.ShapeDtypeStruct((rows, L * r), x.dtype),
        grid_spec=pl.GridSpec(
            grid=grid,
            in_specs=[pl.BlockSpec((rt * r, lt), lambda i, j: (i, j))],
            out_specs=pl.BlockSpec((rt, lt * r), lambda i, j: (i, j)),
        ),
        compiler_params=pltpu.CompilerParams(
            dimension_semantics=("parallel", "parallel"),
            vmem_limit_bytes=_VMEM_LIMIT_BYTES,
        ),
        cost_estimate=pl.CostEstimate(
            flops=0,
            transcendentals=0,
            bytes_accessed=2 * x.size * itemsize,
        ),
    )(x2)

    # Free reshape back to (B, C//r, L*r).
    return out2.reshape(B, c_out, L * r)


if __name__ == "__main__":
    key = jax.random.PRNGKey(0)
    k1, k2, k3 = jax.random.split(key, 3)

    # 1) Small shape matching the module spec: (B, C, L) = (2, 8, 16), r = 4.
    #    rows = 4 (not 8-divisible) and L = 16 (not 128-divisible): exercises
    #    the full-extent-block fallback.  Kernel path forced.
    B, C, L, r = 2, 8, 16, 4
    x = jax.random.normal(k1, (B, C, L), dtype=jnp.float32)
    out = jax.block_until_ready(pixel_shuffle_1d(x, r, use_kernel=True))
    assert out.shape == (B, C // r, L * r), out.shape
    assert jnp.array_equal(out, _reference(x, r)), "mismatch (small shape)"

    # 2) Shape exercising multi-step row tiling: rows = 32, L = 512 -> the tile
    #    picker shrinks rt to 8 to guarantee >= 4 grid steps -> grid (4, 1),
    #    full-L lane blocks (contiguous rows, lane-dense 2048-wide stores).
    B2, C2, L2, r2 = 2, 64, 512, 4
    x_big = jax.random.normal(k2, (B2, C2, L2), dtype=jnp.float32)
    out_big = jax.block_until_ready(pixel_shuffle_1d(x_big, r2, use_kernel=True))
    assert out_big.shape == (B2, C2 // r2, L2 * r2), out_big.shape
    assert jnp.array_equal(out_big, _reference(x_big, r2)), "mismatch (row-tiled)"

    # 3) Non-8-divisible row count with lane tiling: rows = 6 (full-extent row
    #    block) and L = 256 tiled into 128-lane blocks -> grid (1, 2).
    B3, C3, L3, r3 = 3, 8, 256, 4
    x_odd = jax.random.normal(k3, (B3, C3, L3), dtype=jnp.float32)
    out_odd = jax.block_until_ready(pixel_shuffle_1d(x_odd, r3, use_kernel=True))
    assert out_odd.shape == (B3, C3 // r3, L3 * r3), out_odd.shape
    assert jnp.array_equal(out_odd, _reference(x_odd, r3)), "mismatch (lane-tiled)"

    print("KERNEL_OK")
</pallas_src>

<mosaic_0001>
module attributes {stable_mosaic.version = 11 : i64} {
  func.func @_pixel_shuffle_1d_kernel(%arg0: i32, %arg1: i32, %arg2: memref<16x16xf32, #tpu.memory_space<vmem>>, %arg3: memref<4x64xf32, #tpu.memory_space<vmem>>) attributes {dimension_semantics = [#tpu.dimension_semantics<parallel>, #tpu.dimension_semantics<parallel>], iteration_bounds = array<i64: 1, 1>, scalar_prefetch = 0 : i64, scratch_operands = 0 : i64, tpu.core_type = #tpu.core_type<tc>, window_params = [{transform_indices = @transform_0, window_bounds = array<i64: 16, 16>}, {transform_indices = @transform_1, window_bounds = array<i64: 4, 64>}]} {
    %c0 = arith.constant 0 : index
    %c0_0 = arith.constant 0 : index
    %0 = vector.load %arg2[%c0, %c0_0] : memref<16x16xf32, #tpu.memory_space<vmem>>, vector<16x16xf32>
    %1 = vector.shape_cast %0 : vector<16x16xf32> to vector<4x4x16xf32>
    %2 = tpu.transpose %1, [0, 2, 1] : vector<4x4x16xf32> -> vector<4x16x4xf32>
    %3 = vector.shape_cast %2 : vector<4x16x4xf32> to vector<4x64xf32>
    %c0_1 = arith.constant 0 : index
    %c0_2 = arith.constant 0 : index
    %4 = vector.load %arg3[%c0_1, %c0_2] : memref<4x64xf32, #tpu.memory_space<vmem>>, vector<4x64xf32>
    tpu.vector_store %arg3[%c0_1, %c0_2], %3 {strides = array<i32>} : memref<4x64xf32, #tpu.memory_space<vmem>>, vector<4x64xf32>,
    return
  }
  func.func @transform_0(%arg0: i32, %arg1: i32) -> (i32, i32) {
    %c0_i32 = arith.constant 0 : i32
    return %arg0, %arg1 : i32, i32
  }
  func.func @transform_1(%arg0: i32, %arg1: i32) -> (i32, i32) {
    %c0_i32 = arith.constant 0 : i32
    return %arg0, %arg1 : i32, i32
  }
}

</mosaic_0001>

<bundles_post_ra>
// kernel: tpu_custom_call.1
= control target key start
LH: loop header
LB: loop body
LE: loop exit
PB: predicated region body
PF: predicated region fallthrough
CT: control target
= control target key end

     0   :  { %6 = vsyncpa [#allocation3], 0  ;;  %s508_s0 = inlined_call_operand.hbm [shape: f32[16,16], index: 0, kind: input, shape index: {}]   ;;  %s509_s1 = inlined_call_operand.hbm [shape: f32[4,64], index: 1, kind: output, shape index: {}]  }
   0x1   :  { %7 = vsyncpa [#allocation4], 0  ;;  %s469_s6 = smov [#allocation2]  }
   0x2   :  { %s13_s7 = sshll.u32 %s469_s6, 4  ;;  %s14_s7 = int_to_ptr.vmem [resolvable:$true] %s13_s7 }
   0x3   :  { %s433_s8 = scalar_lea.vmem %s14_s7, 256  ;;  %p438_p1 = scmp.lt.s32.totalorder %s14_s7, %s14_s7 }
   0x4   :  { %p434_p0 = scmp.ne.s32.totalorder %s14_s7, %s433_s8  ;;  %p439_p2 = scmp.lt.s32.totalorder %s433_s8, %s433_s8 }
   0x6   :  { %p440_p3 = por %p439_p2, %p438_p1 }
   0x8   :  { %p441_p4 = pnand %p440_p3, %p434_p0 }
   0xa   :  { %444 = shalt.err (!%p441_p4)
}
   0xb   :  { %s470_s9 = smov 128   ;;  %s471_s10 = smov 8  }
   0xc   :  { %19 = dma.hbm_to_vmem [thread:$0]  %s508_s0, 256, %s14_s7, [#allocation3], %s470_s9, %s470_s9, %s471_s10  }
   0xd   :  { %465 = dma.done.wait [#allocation3], 256  }
   0xe   :  { %466 = vsyncadd [#allocation3], 4294967040  ;;  %v24_v0 = vld [vmem:[#allocation2 + $0x8] sm:$0xff]  ;;  %v23_v1 = vld [vmem:[#allocation2] sm:$0xff]  ;;  %v472_v4 = vmov 1983009808   ;;  %v164_v6 = vlaneseq }
   0xf   :  { %95 = vxpose.xlu1.b32.start.end [1/1] (short) (narrow) %v24_v0, 16  ;;  %31 = vxpose.xlu0.b32.start.end [1/1] (short) (narrow) %v23_v1, 16  ;;  %v28_v2 = vcombine.high %v24_v0, %v24_v0  ;;  %v27_v3 = vcombine.high %v23_v1, %v23_v1  ;;  %v162_v5 = vunpack.c.l.s4 %v472_v4  ;;  %v473_v9 = vmov 1934713408   ;;  %s474_s0 = smov 24   ;;  %s476_s13 = smov 4  }
  0x10   :  { %v194_v10 = vunpack.c.l.s4 %v473_v9  ;;  %v165_v12 = vshrl.u32 %v164_v6, 7  ;;  %v475_v43 = vmov 0.0   ;;  %s477_s14 = smov 16   ;;  %s478_s15 = smov 32   ;;  %vm355_vm0 = vcmask 31744  }
  0x11   :  { %v163_v11 = vunpack.c.0.s8 %v162_v5  ;;  %s479_s16 = smov 12   ;;  %s480_s17 = smov 40   ;;  %vm357_vm1 = vcmask 64512   ;;  %vm359_vm2 = vcmask 97280   ;;  %vm361_vm3 = vcmask 130048  }
  0x12   :  { %v195_v15 = vunpack.c.0.s8 %v194_v10  ;;  %s481_s18 = smov 20   ;;  %s482_s19 = smov 48   ;;  %vm363_vm4 = vcmask 162816   ;;  %vm365_vm5 = vcmask 195584   ;;  %vm367_vm6 = vcmask 228352  }
  0x13   :  { %v166_v16 = vsub.s32 %v163_v11, %v165_v12  ;;  %s483_s20 = smov 28   ;;  %s484_s21 = smov 56   ;;  %vm369_vm7 = vcmask 261120   ;;  %vm371_vm8 = vcmask 293888   ;;  %vm373_vm9 = vcmask 326656  }
  0x14   :  { %127 = vxpose.xlu1.b32.start.end [1/1] (short) (narrow) %v28_v2, 16  ;;  %63 = vxpose.xlu0.b32.start.end [1/1] (short) (narrow) %v27_v3, 16  ;;  %v198_v23 = vsub.s32 %v195_v15, %v165_v12  ;;  %s485_s22 = smov 36   ;;  %s486_s23 = smov 44   ;;  %vm375_vm10 = vcmask 359424   ;;  %vm377_vm11 = vcmask 392192  }
  0x15   :  { %s487_s24 = smov 52   ;;  %s488_s25 = smov 60   ;;  %vm379_vm12 = vcmask 424960   ;;  %vm381_vm13 = vcmask 457728   ;;  %vm383_vm14 = vcmask 490496   ;;  %vm385_vm15 = vcmask 519168  }
  0x16   :  { %s489_s26 = smov [#allocation5]  }
  0x17   :  { %s393_s27 = sshll.u32 %s489_s26, 4  ;;  %s394_s27 = int_to_ptr.vmem [resolvable:$true] %s393_s27 }
  0x18   :  { %s445_s28 = scalar_lea.vmem %s394_s27, 64  ;;  %p450_p6 = scmp.lt.s32.totalorder %s394_s27, %s394_s27 }
  0x19   :  { %p446_p5 = scmp.ne.s32.totalorder %s394_s27, %s445_s28  ;;  %p451_p7 = scmp.lt.s32.totalorder %s445_s28, %s445_s28 }
  0x1b   :  { %p452_p8 = por %p451_p7, %p450_p6 }
  0x1d   :  { %p453_p9 = pnand %p452_p8, %p446_p5 }
  0x8b   :  { %v111_v7 = vpop.trf.xlu1  ;;  %v47_v8 = vpop.trf.xlu0 }
  0x8c   :  { %v159_v17 = vcombine.low %v47_v8, %v111_v7  ;;  %v160_v18 = vcombine.high %v47_v8, %v111_v7 }
  0x8e   :  { %v167_v24 = vrot.slane %v159_v17, %v166_v16  ;;  %v174_v25 = vrot.slane %v160_v18, %v166_v16 }
  0x8f   :  { %v112_v13 = vpop.trf.xlu1  ;;  %v48_v14 = vpop.trf.xlu0 }
  0x90   :  { %v227_v30 = vcombine.low %v48_v14, %v112_v13  ;;  %v228_v46 = vcombine.high %v48_v14, %v112_v13 }
  0x92   :  { %v235_v40 = vrot.slane %v227_v30, %v166_v16  ;;  %v242_v51 = vrot.slane %v228_v46, %v166_v16 }
  0x93   :  { %v143_v19 = vpop.trf.xlu1  ;;  %v79_v20 = vpop.trf.xlu0 }
  0x94   :  { %v175_v21 = vcombine.low %v79_v20, %v143_v19  ;;  %v176_v22 = vcombine.high %v79_v20, %v143_v19 }
  0x96   :  { %v183_v26 = vrot.slane %v175_v21, %v166_v16  ;;  %v190_v27 = vrot.slane %v176_v22, %v166_v16 }
  0x97   :  { %v144_v28 = vpop.trf.xlu1  ;;  %v80_v29 = vpop.trf.xlu0 }
  0x98   :  { %v191_v31 = vcombine.low %v167_v24, %v183_v26  ;;  %v208_v32 = vcombine.high %v174_v25, %v190_v27  ;;  %v243_v33 = vcombine.low %v80_v29, %v144_v28  ;;  %v192_v34 = vcombine.high %v167_v24, %v183_v26 }
  0x99   :  { %v207_v38 = vcombine.low %v174_v25, %v190_v27  ;;  %v244_v41 = vcombine.high %v80_v29, %v144_v28 }
  0x9a   :  { %v251_v35 = vrot.slane %v243_v33, %v166_v16  ;;  %v222_v36 = vrot.slane %v208_v32, %v198_v23  ;;  %v199_v37 = vrot.slane %v191_v31, %v198_v23  ;;  %v206_v39 = vrot.slane %v192_v34, %v198_v23 }
  0x9b   :  { %v215_v45 = vrot.slane %v207_v38, %v198_v23  ;;  %v258_v47 = vrot.slane %v244_v41, %v166_v16 }
  0x9c   :  { %316 = vrot.lane.b32.xlu0 %v222_v36, %s474_s0  ;;  %300 = vrot.lane.b32.xlu1 %v206_v39, %s471_s10  ;;  %v259_v42 = vcombine.low %v235_v40, %v251_v35  ;;  %v223_v44 = vcombine.high %v199_v37, %v475_v43  ;;  %v260_v48 = vcombine.high %v235_v40, %v251_v35 }
  0x9d   :  { %v224_v50 = vcombine.high %v206_v39, %v475_v43  ;;  %v275_v52 = vcombine.low %v242_v51, %v258_v47  ;;  %v225_v54 = vcombine.high %v215_v45, %v475_v43  ;;  %v276_v55 = vcombine.high %v242_v51, %v258_v47 }
  0x9e   :  { %v267_v49 = vrot.slane %v259_v42, %v198_v23  ;;  %v274_v53 = vrot.slane %v260_v48, %v198_v23  ;;  %v226_v57 = vcombine.high %v222_v36, %v475_v43 }
  0x9f   :  { %v283_v56 = vrot.slane %v275_v52, %v198_v23  ;;  %v290_v58 = vrot.slane %v276_v55, %v198_v23 }
  0xa0   :  { %296 = vrot.lane.b32.xlu0 %v223_v44, %s476_s13  ;;  %308 = vrot.lane.b32.xlu1 %v215_v45, %s477_s14  ;;  %v291_v59 = vcombine.high %v267_v49, %v475_v43  ;;  %v292_v60 = vcombine.high %v274_v53, %v475_v43 }
  0xa1   :  { %v293_v61 = vcombine.high %v283_v56, %v475_v43  ;;  %v294_v62 = vcombine.high %v290_v58, %v475_v43 }
  0xa4   :  { %324 = vrot.lane.b32.xlu0 %v267_v49, %s478_s15  ;;  %304 = vrot.lane.b32.xlu1 %v224_v50, %s479_s16 }
  0xa8   :  { %332 = vrot.lane.b32.xlu0 %v274_v53, %s480_s17  ;;  %312 = vrot.lane.b32.xlu1 %v225_v54, %s481_s18 }
  0xac   :  { %340 = vrot.lane.b32.xlu0 %v283_v56, %s482_s19  ;;  %320 = vrot.lane.b32.xlu1 %v226_v57, %s483_s20 }
  0xb0   :  { %348 = vrot.lane.b32.xlu0 %v290_v58, %s484_s21  ;;  %328 = vrot.lane.b32.xlu1 %v291_v59, %s485_s22 }
  0xb4   :  { %336 = vrot.lane.b32.xlu1 %v292_v60, %s486_s23 }
  0xb8   :  { %344 = vrot.lane.b32.xlu1 %v293_v61, %s487_s24 }
  0xbc   :  { %352 = vrot.lane.b32.xlu1 %v294_v62, %s488_s25 }
 0x10e   :  { %v317_v63 = vpop.permute.xlu0 %316  ;;  %v301_v0 = vpop.permute.xlu1 %300 }
 0x112   :  { %v297_v1 = vpop.permute.xlu0 %296  ;;  %v309_v2 = vpop.permute.xlu1 %308 }
 0x113   :  { %v356_v3 = vsel %vm355_vm0, %v199_v37, %v297_v1 }
 0x114   :  { %v358_v5 = vsel %vm357_vm1, %v356_v3, %v301_v0 }
 0x116   :  { %v305_v4 = vpop.permute.xlu1 %304  ;;  %v325_v9 = vpop.permute.xlu0 %324 }
 0x117   :  { %v360_v6 = vsel %vm359_vm2, %v358_v5, %v305_v4 }
 0x118   :  { %v362_v8 = vsel %vm361_vm3, %v360_v6, %v309_v2 }
 0x11a   :  { %v313_v7 = vpop.permute.xlu1 %312  ;;  %v333_v14 = vpop.permute.xlu0 %332 }
 0x11b   :  { %v364_v10 = vsel %vm363_vm4, %v362_v8, %v313_v7 }
 0x11c   :  { %v366_v12 = vsel %vm365_vm5, %v364_v10, %v317_v63 }
 0x11e   :  { %v321_v11 = vpop.permute.xlu1 %320  ;;  %v341_v20 = vpop.permute.xlu0 %340 }
 0x11f   :  { %v368_v13 = vsel %vm367_vm6, %v366_v12, %v321_v11 }
 0x120   :  { %v370_v16 = vsel %vm369_vm7, %v368_v13, %v325_v9 }
 0x122   :  { %v329_v15 = vpop.permute.xlu1 %328  ;;  %v349_v25 = vpop.permute.xlu0 %348 }
 0x123   :  { %v372_v17 = vsel %vm371_vm8, %v370_v16, %v329_v15 }
 0x124   :  { %v374_v19 = vsel %vm373_vm9, %v372_v17, %v333_v14 }
 0x126   :  { %v337_v18 = vpop.permute.xlu1 %336 }
 0x127   :  { %v376_v21 = vsel %vm375_vm10, %v374_v19, %v337_v18 }
 0x128   :  { %v378_v23 = vsel %vm377_vm11, %v376_v21, %v341_v20 }
 0x12a   :  { %v345_v22 = vpop.permute.xlu1 %344 }
 0x12b   :  { %v380_v24 = vsel %vm379_vm12, %v378_v23, %v345_v22 }
 0x12c   :  { %v382_v27 = vsel %vm381_vm13, %v380_v24, %v349_v25 }
 0x12e   :  { %v353_v26 = vpop.permute.xlu1 %352 }
 0x12f   :  { %v384_v28 = vsel %vm383_vm14, %v382_v27, %v353_v26 }
 0x130   :  { %386 = vst.msk [vmem:[#allocation5] sm:$0xf] %vm385_vm15, %v384_v28 }
 0x131   :  { %456 = shalt.err (!%p453_p9)
}
 0x132   :  { %396 = dma.vmem_to_hbm [thread:$0]  %s394_s27, 64, %s509_s1, [#allocation4]  }
 0x133   :  { %467 = dma.done.wait [#allocation4], 64  }
 0x134   :  { %468 = vsyncadd [#allocation4], 4294967232 }
 0x135   :  { %400 = vsyncpa [#allocation3], 1 }
 0x136   :  { %401 = vsyncpa [#allocation4], 1 }

</bundles_post_ra>
